<compile_context>
chip_gen: v7x
topology: tpu7x:2x2x1
jax: 0.10.0
libtpu: 0.0.40
codegen_flags: <defaults>
</compile_context>

<pallas_src>
import jax
import jax.numpy as jnp
from jax.experimental import pallas as pl
from jax.experimental.pallas import tpu as pltpu


HIDDEN = 256
_LANE = 128


def _round_up(n, m):
    return ((n + m - 1) // m) * m


# ---------------------------------------------------------------------------
# Kernel
# ---------------------------------------------------------------------------
def _actor_kernel(max_act_ref,                     # (1,1) SMEM scalar
                  x_ref,                           # (TB, K_PAD)   bf16
                  w1_ref, b1_ref,                  # (K_PAD, H) bf16, (1, H) f32
                  w2_ref, b2_ref,                  # (H, H) bf16,   (1, H) f32
                  w3_ref, b3_ref,                  # (H, H) bf16,   (1, H) f32
                  wo_ref, bo_ref,                  # (H, N_PAD) bf16, (1, N_PAD) f32
                  out_ref):                        # (TB, N_PAD)   f32
    bf16 = jnp.bfloat16

    # fc1 + relu (bf16 MXU inputs, f32 accumulate, f32 elementwise)
    h = jnp.dot(x_ref[...], w1_ref[...], preferred_element_type=jnp.float32)
    h = jnp.maximum(h + b1_ref[...], 0.0)
    # fc2 + relu
    h = jnp.dot(h.astype(bf16), w2_ref[...], preferred_element_type=jnp.float32)
    h = jnp.maximum(h + b2_ref[...], 0.0)
    # fc3 + relu
    h = jnp.dot(h.astype(bf16), w3_ref[...], preferred_element_type=jnp.float32)
    h = jnp.maximum(h + b3_ref[...], 0.0)
    # action head + tanh, scaled by max_action (SMEM scalar -> VPU mul)
    a = jnp.dot(h.astype(bf16), wo_ref[...], preferred_element_type=jnp.float32)
    a = max_act_ref[0, 0] * jnp.tanh(a + bo_ref[...])
    out_ref[...] = a.astype(out_ref.dtype)


# ---------------------------------------------------------------------------
# Parameter packing (pad + cast to the kernel layout)
# ---------------------------------------------------------------------------
def pack_actor_params(params):
    """Pad K/action dims to 128 lanes and cast weights to bf16 for the kernel."""
    in_dim, hidden = params["w1"].shape
    action_dim = params["wo"].shape[1]
    k_pad = _round_up(in_dim, _LANE)
    n_pad = _round_up(action_dim, _LANE)

    w1 = jnp.zeros((k_pad, hidden), jnp.bfloat16)
    w1 = w1.at[:in_dim, :].set(params["w1"].astype(jnp.bfloat16))
    wo = jnp.zeros((hidden, n_pad), jnp.bfloat16)
    wo = wo.at[:, :action_dim].set(params["wo"].astype(jnp.bfloat16))
    bo = jnp.zeros((1, n_pad), jnp.float32)
    bo = bo.at[:, :action_dim].set(params["bo"].astype(jnp.float32))

    return dict(
        w1=w1, b1=params["b1"].astype(jnp.float32),
        w2=params["w2"].astype(jnp.bfloat16), b2=params["b2"].astype(jnp.float32),
        w3=params["w3"].astype(jnp.bfloat16), b3=params["b3"].astype(jnp.float32),
        wo=wo, bo=bo,
        in_dim=in_dim, hidden=hidden, action_dim=action_dim,
        k_pad=k_pad, n_pad=n_pad,
    )


# ---------------------------------------------------------------------------
# Wrapper
# ---------------------------------------------------------------------------
def actor_forward(x, packed, max_action, *, tile_b=256):
    """Run the actor MLP forward pass as a batch-tiled Pallas TPU kernel."""
    B, in_dim = x.shape
    assert in_dim == packed["in_dim"], "feature dim mismatch with packed params"
    H = packed["hidden"]
    k_pad = packed["k_pad"]
    n_pad = packed["n_pad"]
    action_dim = packed["action_dim"]

    # Batch tile: multiple of 8 sublanes; shrink for tiny batches.
    tb = min(tile_b, _round_up(B, 8))
    b_pad = _round_up(B, tb)
    grid = (b_pad // tb,)

    # Pad + cast the input once in the wrapper (lane-dense K, sublane-dense B).
    x_p = jnp.zeros((b_pad, k_pad), jnp.bfloat16)
    x_p = x_p.at[:B, :in_dim].set(x.astype(jnp.bfloat16))

    max_act = jnp.full((1, 1), max_action, jnp.float32)

    resident = lambda shape: pl.BlockSpec(shape, lambda i: (0, 0))
    in_specs = [
        pl.BlockSpec((1, 1), lambda i: (0, 0),
                     memory_space=pltpu.MemorySpace.SMEM),   # max_action scalar
        pl.BlockSpec((tb, k_pad), lambda i: (i, 0)),         # x tile (pipelined)
        resident((k_pad, H)), resident((1, H)),              # W1, b1 (VMEM-resident)
        resident((H, H)),     resident((1, H)),              # W2, b2
        resident((H, H)),     resident((1, H)),              # W3, b3
        resident((H, n_pad)), resident((1, n_pad)),          # Wo, bo
    ]
    out_specs = pl.BlockSpec((tb, n_pad), lambda i: (i, 0))

    flops = 2 * b_pad * (k_pad * H + 2 * H * H + H * n_pad)
    weight_bytes = (k_pad * H + 2 * H * H + H * n_pad) * 2 + (3 * H + n_pad) * 4
    bytes_accessed = b_pad * k_pad * 2 + b_pad * n_pad * 4 + weight_bytes + 4
    cost = pl.CostEstimate(flops=flops,
                           transcendentals=b_pad * n_pad,
                           bytes_accessed=bytes_accessed)

    out = pl.pallas_call(
        _actor_kernel,
        out_shape=jax.ShapeDtypeStruct((b_pad, n_pad), jnp.float32),
        grid=grid,
        in_specs=in_specs,
        out_specs=out_specs,
        compiler_params=pltpu.CompilerParams(
            dimension_semantics=("parallel",)),
        cost_estimate=cost,
    )(
        max_act, x_p,
        packed["w1"], packed["b1"],
        packed["w2"], packed["b2"],
        packed["w3"], packed["b3"],
        packed["wo"], packed["bo"],
    )
    return out[:B, :action_dim]


# ---------------------------------------------------------------------------
# Init + references
# ---------------------------------------------------------------------------
def init_actor_params(key, obs_dim, goal_dim, action_dim, hidden=HIDDEN):
    """PyTorch-Linear-style init: U(-1/sqrt(fan_in), 1/sqrt(fan_in))."""
    in_dim = obs_dim + goal_dim
    keys = jax.random.split(key, 8)

    def linear(kw, kb, fan_in, fan_out):
        bound = 1.0 / jnp.sqrt(float(fan_in))
        w = jax.random.uniform(kw, (fan_in, fan_out), jnp.float32, -bound, bound)
        b = jax.random.uniform(kb, (1, fan_out), jnp.float32, -bound, bound)
        return w, b

    w1, b1 = linear(keys[0], keys[1], in_dim, hidden)
    w2, b2 = linear(keys[2], keys[3], hidden, hidden)
    w3, b3 = linear(keys[4], keys[5], hidden, hidden)
    wo, bo = linear(keys[6], keys[7], hidden, action_dim)
    return dict(w1=w1, b1=b1, w2=w2, b2=b2, w3=w3, b3=b3, wo=wo, bo=bo)


def actor_reference(x, params, max_action, *, bf16_weights=True):
    """Pure-JAX reference. bf16_weights=True mirrors the kernel's matmul dtypes."""
    dt = jnp.bfloat16 if bf16_weights else jnp.float32

    def dense(h, w, b):
        return jnp.dot(h.astype(dt), w.astype(dt),
                       preferred_element_type=jnp.float32) + b

    h = jnp.maximum(dense(x, params["w1"], params["b1"]), 0.0)
    h = jnp.maximum(dense(h, params["w2"], params["b2"]), 0.0)
    h = jnp.maximum(dense(h, params["w3"], params["b3"]), 0.0)
    return max_action * jnp.tanh(dense(h, params["wo"], params["bo"]))


# ---------------------------------------------------------------------------
if __name__ == "__main__":
    # env_params consistent with the module: obs=10, goal=3, action=4, action_max=1.0
    obs_dim, goal_dim, action_dim = 10, 3, 4
    max_action = 1.0
    batch = 2

    key = jax.random.PRNGKey(0)
    k_params, k_x = jax.random.split(key)

    params = init_actor_params(k_params, obs_dim, goal_dim, action_dim)
    packed = pack_actor_params(params)
    x = jax.random.normal(k_x, (batch, obs_dim + goal_dim), jnp.float32)

    actions = actor_forward(x, packed, max_action)
    actions = jax.block_until_ready(actions)
    assert actions.shape == (batch, action_dim)

    # Tight check vs a reference using the same bf16-weight / f32-accumulate math.
    ref_bf16 = actor_reference(x, params, max_action, bf16_weights=True)
    assert jnp.allclose(actions, ref_bf16, atol=2e-3, rtol=2e-3), \
        "mismatch vs bf16 reference"

    # Loose sanity check vs the full-f32 reference (bf16 weight quantization error).
    ref_f32 = actor_reference(x, params, max_action, bf16_weights=False)
    assert jnp.allclose(actions, ref_f32, atol=5e-2, rtol=5e-2), \
        "mismatch vs f32 reference"

    print("KERNEL_OK")
</pallas_src>

<mosaic_0001>
module attributes {stable_mosaic.version = 11 : i64} {
  func.func @_actor_kernel(%arg0: i32, %arg1: memref<1x1xf32, #tpu.memory_space<smem>>, %arg2: memref<8x128xbf16, #tpu.memory_space<vmem>>, %arg3: memref<128x256xbf16, #tpu.memory_space<vmem>>, %arg4: memref<1x256xf32, #tpu.memory_space<vmem>>, %arg5: memref<256x256xbf16, #tpu.memory_space<vmem>>, %arg6: memref<1x256xf32, #tpu.memory_space<vmem>>, %arg7: memref<256x256xbf16, #tpu.memory_space<vmem>>, %arg8: memref<1x256xf32, #tpu.memory_space<vmem>>, %arg9: memref<256x128xbf16, #tpu.memory_space<vmem>>, %arg10: memref<1x128xf32, #tpu.memory_space<vmem>>, %arg11: memref<8x128xf32, #tpu.memory_space<vmem>>) attributes {dimension_semantics = [#tpu.dimension_semantics<parallel>], iteration_bounds = array<i64: 1>, scalar_prefetch = 0 : i64, scratch_operands = 0 : i64, tpu.core_type = #tpu.core_type<tc>, window_params = [{transform_indices = @transform_0, window_bounds = array<i64: 1, 1>}, {transform_indices = @transform_1, window_bounds = array<i64: 8, 128>}, {pipeline_mode = #tpu.pipeline_mode<synchronous>, transform_indices = @transform_2, window_bounds = array<i64: 128, 256>}, {pipeline_mode = #tpu.pipeline_mode<synchronous>, transform_indices = @transform_3, window_bounds = array<i64: 1, 256>}, {pipeline_mode = #tpu.pipeline_mode<synchronous>, transform_indices = @transform_4, window_bounds = array<i64: 256, 256>}, {pipeline_mode = #tpu.pipeline_mode<synchronous>, transform_indices = @transform_5, window_bounds = array<i64: 1, 256>}, {pipeline_mode = #tpu.pipeline_mode<synchronous>, transform_indices = @transform_6, window_bounds = array<i64: 256, 256>}, {pipeline_mode = #tpu.pipeline_mode<synchronous>, transform_indices = @transform_7, window_bounds = array<i64: 1, 256>}, {pipeline_mode = #tpu.pipeline_mode<synchronous>, transform_indices = @transform_8, window_bounds = array<i64: 256, 128>}, {pipeline_mode = #tpu.pipeline_mode<synchronous>, transform_indices = @transform_9, window_bounds = array<i64: 1, 128>}, {transform_indices = @transform_10, window_bounds = array<i64: 8, 128>}]} {
    %c0 = arith.constant 0 : index
    %c0_0 = arith.constant 0 : index
    %0 = vector.load %arg2[%c0, %c0_0] : memref<8x128xbf16, #tpu.memory_space<vmem>>, vector<8x128xbf16>
    %c0_1 = arith.constant 0 : index
    %c0_2 = arith.constant 0 : index
    %1 = vector.load %arg3[%c0_1, %c0_2] : memref<128x256xbf16, #tpu.memory_space<vmem>>, vector<128x256xbf16>
    %cst = arith.constant dense<0.000000e+00> : vector<8x256xf32>
    %2 = tpu.matmul %0, %1, %cst {dimension_numbers = #tpu.dot_dimension_numbers<[1], [0], [0], [1], [0, 0, 1, 1], [], []>} : vector<8x128xbf16>, vector<128x256xbf16>, vector<8x256xf32> -> vector<8x256xf32>
    %c0_3 = arith.constant 0 : index
    %c0_4 = arith.constant 0 : index
    %3 = vector.load %arg4[%c0_3, %c0_4] : memref<1x256xf32, #tpu.memory_space<vmem>>, vector<1x256xf32>
    %4 = vector.broadcast %3 : vector<1x256xf32> to vector<8x256xf32>
    %5 = arith.addf %2, %4 : vector<8x256xf32>
    %cst_5 = arith.constant 0.000000e+00 : f32
    %6 = vector.broadcast %cst_5 : f32 to vector<8x256xf32>
    %7 = arith.maximumf %5, %6 : vector<8x256xf32>
    %8 = arith.truncf %7 : vector<8x256xf32> to vector<8x256xbf16>
    %c0_6 = arith.constant 0 : index
    %c0_7 = arith.constant 0 : index
    %9 = vector.load %arg5[%c0_6, %c0_7] : memref<256x256xbf16, #tpu.memory_space<vmem>>, vector<256x256xbf16>
    %cst_8 = arith.constant dense<0.000000e+00> : vector<8x256xf32>
    %10 = tpu.matmul %8, %9, %cst_8 {dimension_numbers = #tpu.dot_dimension_numbers<[1], [0], [0], [1], [0, 0, 1, 1], [], []>} : vector<8x256xbf16>, vector<256x256xbf16>, vector<8x256xf32> -> vector<8x256xf32>
    %c0_9 = arith.constant 0 : index
    %c0_10 = arith.constant 0 : index
    %11 = vector.load %arg6[%c0_9, %c0_10] : memref<1x256xf32, #tpu.memory_space<vmem>>, vector<1x256xf32>
    %12 = vector.broadcast %11 : vector<1x256xf32> to vector<8x256xf32>
    %13 = arith.addf %10, %12 : vector<8x256xf32>
    %cst_11 = arith.constant 0.000000e+00 : f32
    %14 = vector.broadcast %cst_11 : f32 to vector<8x256xf32>
    %15 = arith.maximumf %13, %14 : vector<8x256xf32>
    %16 = arith.truncf %15 : vector<8x256xf32> to vector<8x256xbf16>
    %c0_12 = arith.constant 0 : index
    %c0_13 = arith.constant 0 : index
    %17 = vector.load %arg7[%c0_12, %c0_13] : memref<256x256xbf16, #tpu.memory_space<vmem>>, vector<256x256xbf16>
    %cst_14 = arith.constant dense<0.000000e+00> : vector<8x256xf32>
    %18 = tpu.matmul %16, %17, %cst_14 {dimension_numbers = #tpu.dot_dimension_numbers<[1], [0], [0], [1], [0, 0, 1, 1], [], []>} : vector<8x256xbf16>, vector<256x256xbf16>, vector<8x256xf32> -> vector<8x256xf32>
    %c0_15 = arith.constant 0 : index
    %c0_16 = arith.constant 0 : index
    %19 = vector.load %arg8[%c0_15, %c0_16] : memref<1x256xf32, #tpu.memory_space<vmem>>, vector<1x256xf32>
    %20 = vector.broadcast %19 : vector<1x256xf32> to vector<8x256xf32>
    %21 = arith.addf %18, %20 : vector<8x256xf32>
    %cst_17 = arith.constant 0.000000e+00 : f32
    %22 = vector.broadcast %cst_17 : f32 to vector<8x256xf32>
    %23 = arith.maximumf %21, %22 : vector<8x256xf32>
    %24 = arith.truncf %23 : vector<8x256xf32> to vector<8x256xbf16>
    %c0_18 = arith.constant 0 : index
    %c0_19 = arith.constant 0 : index
    %25 = vector.load %arg9[%c0_18, %c0_19] : memref<256x128xbf16, #tpu.memory_space<vmem>>, vector<256x128xbf16>
    %cst_20 = arith.constant dense<0.000000e+00> : vector<8x128xf32>
    %26 = tpu.matmul %24, %25, %cst_20 {dimension_numbers = #tpu.dot_dimension_numbers<[1], [0], [0], [1], [0, 0, 1, 1], [], []>} : vector<8x256xbf16>, vector<256x128xbf16>, vector<8x128xf32> -> vector<8x128xf32>
    %c0_21 = arith.constant 0 : index
    %c0_22 = arith.constant 0 : index
    %27 = memref.load %arg1[%c0_21, %c0_22] : memref<1x1xf32, #tpu.memory_space<smem>>
    %c0_23 = arith.constant 0 : index
    %c0_24 = arith.constant 0 : index
    %28 = vector.load %arg10[%c0_23, %c0_24] : memref<1x128xf32, #tpu.memory_space<vmem>>, vector<1x128xf32>
    %29 = vector.broadcast %28 : vector<1x128xf32> to vector<8x128xf32>
    %30 = arith.addf %26, %29 : vector<8x128xf32>
    %31 = math.tanh %30 : vector<8x128xf32>
    %32 = vector.broadcast %27 : f32 to vector<8x128xf32>
    %33 = arith.mulf %32, %31 : vector<8x128xf32>
    %c0_25 = arith.constant 0 : index
    %c0_26 = arith.constant 0 : index
    %34 = vector.load %arg11[%c0_25, %c0_26] : memref<8x128xf32, #tpu.memory_space<vmem>>, vector<8x128xf32>
    tpu.vector_store %arg11[%c0_25, %c0_26], %33 {strides = array<i32>} : memref<8x128xf32, #tpu.memory_space<vmem>>, vector<8x128xf32>,
    return
  }
  func.func @transform_0(%arg0: i32) -> (i32, i32) {
    %c0_i32 = arith.constant 0 : i32
    %c0_i32_0 = arith.constant 0 : i32
    %c0_i32_1 = arith.constant 0 : i32
    return %c0_i32, %c0_i32_0 : i32, i32
  }
  func.func @transform_1(%arg0: i32) -> (i32, i32) {
    %c0_i32 = arith.constant 0 : i32
    %c0_i32_0 = arith.constant 0 : i32
    return %arg0, %c0_i32 : i32, i32
  }
  func.func @transform_2(%arg0: i32) -> (i32, i32) {
    %c0_i32 = arith.constant 0 : i32
    %c0_i32_0 = arith.constant 0 : i32
    %c0_i32_1 = arith.constant 0 : i32
    return %c0_i32, %c0_i32_0 : i32, i32
  }
  func.func @transform_3(%arg0: i32) -> (i32, i32) {
    %c0_i32 = arith.constant 0 : i32
    %c0_i32_0 = arith.constant 0 : i32
    %c0_i32_1 = arith.constant 0 : i32
    return %c0_i32, %c0_i32_0 : i32, i32
  }
  func.func @transform_4(%arg0: i32) -> (i32, i32) {
    %c0_i32 = arith.constant 0 : i32
    %c0_i32_0 = arith.constant 0 : i32
    %c0_i32_1 = arith.constant 0 : i32
    return %c0_i32, %c0_i32_0 : i32, i32
  }
  func.func @transform_5(%arg0: i32) -> (i32, i32) {
    %c0_i32 = arith.constant 0 : i32
    %c0_i32_0 = arith.constant 0 : i32
    %c0_i32_1 = arith.constant 0 : i32
    return %c0_i32, %c0_i32_0 : i32, i32
  }
  func.func @transform_6(%arg0: i32) -> (i32, i32) {
    %c0_i32 = arith.constant 0 : i32
    %c0_i32_0 = arith.constant 0 : i32
    %c0_i32_1 = arith.constant 0 : i32
    return %c0_i32, %c0_i32_0 : i32, i32
  }
  func.func @transform_7(%arg0: i32) -> (i32, i32) {
    %c0_i32 = arith.constant 0 : i32
    %c0_i32_0 = arith.constant 0 : i32
    %c0_i32_1 = arith.constant 0 : i32
    return %c0_i32, %c0_i32_0 : i32, i32
  }
  func.func @transform_8(%arg0: i32) -> (i32, i32) {
    %c0_i32 = arith.constant 0 : i32
    %c0_i32_0 = arith.constant 0 : i32
    %c0_i32_1 = arith.constant 0 : i32
    return %c0_i32, %c0_i32_0 : i32, i32
  }
  func.func @transform_9(%arg0: i32) -> (i32, i32) {
    %c0_i32 = arith.constant 0 : i32
    %c0_i32_0 = arith.constant 0 : i32
    %c0_i32_1 = arith.constant 0 : i32
    return %c0_i32, %c0_i32_0 : i32, i32
  }
  func.func @transform_10(%arg0: i32) -> (i32, i32) {
    %c0_i32 = arith.constant 0 : i32
    %c0_i32_0 = arith.constant 0 : i32
    return %arg0, %c0_i32 : i32, i32
  }
}

</mosaic_0001>

<bundles_post_ra>
// kernel: tpu_custom_call.1
= control target key start
LH: loop header
LB: loop body
LE: loop exit
PB: predicated region body
PF: predicated region fallthrough
CT: control target
= control target key end

     0   :  { %16 = vsyncpa [#allocation4], 0  ;;  %s1533_s0 = inlined_call_operand.<no memory space> [shape: f32[1,1], index: 0, kind: input, shape index: {}]   ;;  %s1534_s1 = inlined_call_operand.hbm [shape: bf16[8,128], index: 1, kind: input, shape index: {}]   ;;  %s1535_s2 = inlined_call_operand.hbm [shape: bf16[128,256], index: 2, kind: input, shape index: {}]   ;;  %s1536_s3 = inlined_call_operand.vmem [shape: f32[1,256], index: 3, kind: input, shape index: {}]   ;;  %s1537_s4 = inlined_call_operand.hbm [shape: bf16[256,256], index: 4, kind: input, shape index: {}]   ;;  %s1538_s5 = inlined_call_operand.vmem [shape: f32[1,256], index: 5, kind: input, shape index: {}]   ;;  %s1539_s6 = inlined_call_operand.hbm [shape: bf16[256,256], index: 6, kind: input, shape index: {}]   ;;  %s1540_s7 = inlined_call_operand.vmem [shape: f32[1,256], index: 7, kind: input, shape index: {}]   ;;  %s1541_s8 = inlined_call_operand.hbm [shape: bf16[256,128], index: 8, kind: input, shape index: {}]   ;;  %s1542_s9 = inlined_call_operand.vmem [shape: f32[1,128], index: 9, kind: input, shape index: {}]   ;;  %s1543_s10 = inlined_call_operand.hbm [shape: f32[8,128], index: 10, kind: output, shape index: {}]  }
   0x1   :  { %17 = vsyncpa [#allocation7], 0 }
   0x2   :  { %18 = vsyncpa [#allocation10], 0 }
   0x3   :  { %19 = vsyncpa [#allocation5], 0  ;;  %s1361_s13 = smov [#allocation6]   ;;  %s1221_s17 = scalar_lea.hbm %s1535_s2, 2048 }
   0x4   :  { %s37_s14 = sshll.u32 %s1361_s13, 4  ;;  %p1222_p0 = scmp.ne.s32.totalorder %s1535_s2, %s1221_s17  ;;  %s38_s14 = int_to_ptr.vmem [resolvable:$true] %s37_s14 }
   0x5   :  { %p1225_p1 = scmp.lt.u32.totalorder %s1221_s17, %s1535_s2 }
   0x7   :  { %p1227_p2 = pnand %p1225_p1, %p1222_p0 }
   0x9   :  { %1230 = shalt.err (!%p1227_p2)
}
   0xa   :  { %s1231_s22 = scalar_lea.vmem %s38_s14, 2048  ;;  %p1236_p4 = scmp.lt.s32.totalorder %s38_s14, %s38_s14 }
   0xb   :  { %p1232_p3 = scmp.ne.s32.totalorder %s38_s14, %s1231_s22  ;;  %p1237_p5 = scmp.lt.s32.totalorder %s1231_s22, %s1231_s22 }
   0xd   :  { %p1238_p6 = por %p1237_p5, %p1236_p4 }
   0xf   :  { %p1239_p7 = pnand %p1238_p6, %p1232_p3 }
  0x11   :  { %1242 = shalt.err (!%p1239_p7)
}
  0x12   :  { %s1362_s23 = smov 128   ;;  %s1363_s24 = smov 8  }
  0x13   :  { %43 = dma.hbm_to_vmem [thread:$0]  %s1535_s2, 2048, %s38_s14, [#allocation7], %s1362_s23, %s1362_s23, %s1363_s24  }
  0x14   :  { %s1364_s27 = smov [#allocation9]   ;;  %s1365_s29 = smov [#allocation3]  }
  0x15   :  { %s65_s28 = sshll.u32 %s1364_s27, 4  ;;  %s28_s30 = sshll.u32 %s1365_s29, 4  ;;  %s66_s28 = int_to_ptr.vmem [resolvable:$true] %s65_s28  ;;  %s29_s30 = int_to_ptr.vmem [resolvable:$true] %s28_s30 }
  0x16   :  { %s1243_s13 = scalar_lea.hbm %s1539_s6, 4096 }
  0x17   :  { %p1244_p8 = scmp.ne.s32.totalorder %s1539_s6, %s1243_s13  ;;  %p1247_p9 = scmp.lt.u32.totalorder %s1243_s13, %s1539_s6 }
  0x19   :  { %p1249_p10 = pnand %p1247_p9, %p1244_p8 }
  0x1b   :  { %1252 = shalt.err (!%p1249_p10)
}
  0x1c   :  { %s1253_s2 = scalar_lea.vmem %s66_s28, 4096  ;;  %p1258_p12 = scmp.lt.s32.totalorder %s66_s28, %s66_s28 }
  0x1d   :  { %p1254_p11 = scmp.ne.s32.totalorder %s66_s28, %s1253_s2  ;;  %p1259_p13 = scmp.lt.s32.totalorder %s1253_s2, %s1253_s2 }
  0x1f   :  { %p1260_p0 = por %p1259_p13, %p1258_p12 }
  0x21   :  { %p1261_p1 = pnand %p1260_p0, %p1254_p11 }
  0x23   :  { %1264 = shalt.err (!%p1261_p1)
}
  0x24   :  { %71 = dma.hbm_to_vmem [thread:$0]  %s1539_s6, 4096, %s66_s28, [#allocation10], %s1362_s23, %s1362_s23, %s1363_s24  }
  0x25   :  { %s1265_s22 = scalar_lea.hbm %s1534_s1, 64 }
  0x26   :  { %p1266_p2 = scmp.ne.s32.totalorder %s1534_s1, %s1265_s22  ;;  %p1269_p3 = scmp.lt.u32.totalorder %s1265_s22, %s1534_s1 }
  0x28   :  { %p1271_p4 = pnand %p1269_p3, %p1266_p2 }
  0x2a   :  { %1274 = shalt.err (!%p1271_p4)
}
  0x2b   :  { %s1275_s11 = scalar_lea.vmem %s29_s30, 64  ;;  %p1280_p6 = scmp.lt.s32.totalorder %s29_s30, %s29_s30 }
  0x2c   :  { %p1276_p5 = scmp.ne.s32.totalorder %s29_s30, %s1275_s11  ;;  %p1281_p7 = scmp.lt.s32.totalorder %s1275_s11, %s1275_s11 }
  0x2e   :  { %p1282_p8 = por %p1281_p7, %p1280_p6 }
  0x30   :  { %p1283_p9 = pnand %p1282_p8, %p1276_p5 }
  0x32   :  { %1286 = shalt.err (!%p1283_p9)
}
  0x33   :  { %31 = dma.hbm_to_vmem [thread:$0]  %s1534_s1, 64, %s29_s30, [#allocation4]  }
  0x34   :  { %s1366_s12 = smov [#allocation8]   ;;  %s1367_s15 = smov [#allocation11]  }
  0x35   :  { %s51_s13 = sshll.u32 %s1366_s12, 4  ;;  %s79_s16 = sshll.u32 %s1367_s15, 4  ;;  %s52_s13 = int_to_ptr.vmem [resolvable:$true] %s51_s13  ;;  %s80_s16 = int_to_ptr.vmem [resolvable:$true] %s79_s16 }
  0x36   :  { %s1287_s2 = scalar_lea.hbm %s1537_s4, 4096 }
  0x37   :  { %p1288_p10 = scmp.ne.s32.totalorder %s1537_s4, %s1287_s2  ;;  %p1291_p11 = scmp.lt.u32.totalorder %s1287_s2, %s1537_s4 }
  0x39   :  { %p1293_p12 = pnand %p1291_p11, %p1288_p10 }
  0x3b   :  { %1296 = shalt.err (!%p1293_p12)
}
  0x3c   :  { %s1297_s1 = scalar_lea.vmem %s52_s13, 4096  ;;  %p1302_p0 = scmp.lt.s32.totalorder %s52_s13, %s52_s13 }
  0x3d   :  { %p1298_p13 = scmp.ne.s32.totalorder %s52_s13, %s1297_s1  ;;  %p1303_p1 = scmp.lt.s32.totalorder %s1297_s1, %s1297_s1 }
  0x3f   :  { %p1304_p2 = por %p1303_p1, %p1302_p0 }
  0x41   :  { %p1305_p3 = pnand %p1304_p2, %p1298_p13 }
  0x43   :  { %1308 = shalt.err (!%p1305_p3)
}
  0x44   :  { %57 = dma.hbm_to_vmem [thread:$0]  %s1537_s4, 4096, %s52_s13, [#allocation7], %s1362_s23, %s1362_s23, %s1363_s24  }
  0x45   :  { %s1309_s27 = scalar_lea.hbm %s1541_s8, 2048 }
  0x46   :  { %p1310_p4 = scmp.ne.s32.totalorder %s1541_s8, %s1309_s27  ;;  %p1313_p5 = scmp.lt.u32.totalorder %s1309_s27, %s1541_s8 }
  0x48   :  { %p1315_p6 = pnand %p1313_p5, %p1310_p4 }
  0x4a   :  { %1318 = shalt.err (!%p1315_p6)
}
  0x4b   :  { %s1319_s12 = scalar_lea.vmem %s80_s16, 2048  ;;  %p1324_p8 = scmp.lt.s32.totalorder %s80_s16, %s80_s16 }
  0x4c   :  { %p1320_p7 = scmp.ne.s32.totalorder %s80_s16, %s1319_s12  ;;  %p1325_p9 = scmp.lt.s32.totalorder %s1319_s12, %s1319_s12 }
  0x4e   :  { %p1326_p10 = por %p1325_p9, %p1324_p8 }
  0x50   :  { %p1327_p11 = pnand %p1326_p10, %p1320_p7 }
  0x52   :  { %1330 = shalt.err (!%p1327_p11)
}
  0x53   :  { %s1368_s4 = smov 64   ;;  %s1369_s23 = smov 4  }
  0x54   :  { %85 = dma.hbm_to_vmem [thread:$0]  %s1541_s8, 2048, %s80_s16, [#allocation10], %s1368_s4, %s1368_s4, %s1369_s23  }
  0x55   :  { %1353 = dma.done.wait [#allocation4], 64  }
  0x56   :  { %1354 = vsyncadd [#allocation4], 4294967232 }
  0x57   :  { %1355 = dma.done.wait [#allocation7], 6144  }
  0x58   :  { %1356 = vsyncadd [#allocation7], 4294961152 }
  0x59   :  { %1357 = dma.done.wait [#allocation10], 6144  }
  0x5a   :  { %1358 = vsyncadd [#allocation10], 4294961152  ;;  %v1370_v0 = vmov 0   ;;  %v1083_v1 = vld [vmem:[#allocation6 + $0x4] ss:$8 sps:$4 sm:$0xff]   ;;  %s1371_s19 = smov [#allocation12]  }
  0x5b   :  { %245 = vmatprep.mubr.bf16.mxu0 %v1370_v0  ;;  %v1085_v2 = vld [vmem:[#allocation6] ss:$8 sps:$4 sm:$0xff]   ;;  %213 = vmatprep.subr.bf16.mxu0 %v1083_v1  ;;  %v1086_v3 = vld [vmem:[#allocation6 + $0x14] ss:$8 sps:$4 sm:$0xff]   ;;  %v1088_v4 = vld [vmem:[#allocation6 + $0x10] ss:$8 sps:$4 sm:$0xff]  }
  0x5c   :  { %214 = vmatpush1.bf16.msra.mxu0 %v1085_v2  ;;  %v1089_v5 = vld [vmem:[#allocation6 + $0x24] ss:$8 sps:$4 sm:$0xff]   ;;  %v1091_v6 = vld [vmem:[#allocation6 + $0x20] ss:$8 sps:$4 sm:$0xff]   ;;  %v1092_v7 = vld [vmem:[#allocation6 + $0x34] ss:$8 sps:$4 sm:$0xff]  }
  0x5d   :  { %215 = vmatprep.subr.bf16.mxu0 %v1086_v3  ;;  %v1094_v8 = vld [vmem:[#allocation6 + $0x30] ss:$8 sps:$4 sm:$0xff]   ;;  %v1095_v9 = vld [vmem:[#allocation6 + $0x44] ss:$8 sps:$4 sm:$0xff]   ;;  %v1109_v11 = vld [vmem:[#allocation8] ss:$8 sps:$4 sm:$0xff]  }
  0x5e   :  { %v1107_v10 = vld [vmem:[#allocation8 + $0x4] ss:$8 sps:$4 sm:$0xff]   ;;  %v1110_v12 = vld [vmem:[#allocation8 + $0x14] ss:$8 sps:$4 sm:$0xff]   ;;  %v1097_v13 = vld [vmem:[#allocation6 + $0x40] ss:$8 sps:$4 sm:$0xff]  }
  0x5f   :  { %462 = vmatprep.subr.bf16.mxu1 %v1107_v10  ;;  %v1112_v14 = vld [vmem:[#allocation8 + $0x10] ss:$8 sps:$4 sm:$0xff]   ;;  %v1113_v15 = vld [vmem:[#allocation8 + $0x24] ss:$8 sps:$4 sm:$0xff]   ;;  %v1098_v16 = vld [vmem:[#allocation6 + $0x54] ss:$8 sps:$4 sm:$0xff]  }
  0x60   :  { %216 = vmatpush1.bf16.msra.mxu0 %v1088_v4  ;;  %463 = vmatpush1.bf16.msra.mxu1 %v1109_v11  ;;  %v1100_v17 = vld [vmem:[#allocation6 + $0x50] ss:$8 sps:$4 sm:$0xff]   ;;  %v1115_v18 = vld [vmem:[#allocation8 + $0x20] ss:$8 sps:$4 sm:$0xff]   ;;  %v1116_v19 = vld [vmem:[#allocation8 + $0x34] ss:$8 sps:$4 sm:$0xff]  }
  0x61   :  { %217 = vmatprep.subr.bf16.mxu0 %v1089_v5  ;;  %464 = vmatprep.subr.bf16.mxu1 %v1110_v12  ;;  %v1101_v20 = vld [vmem:[#allocation6 + $0x64] ss:$8 sps:$4 sm:$0xff]   ;;  %v1103_v21 = vld [vmem:[#allocation6 + $0x60] ss:$8 sps:$4 sm:$0xff]   ;;  %v1118_v22 = vld [vmem:[#allocation8 + $0x30] ss:$8 sps:$4 sm:$0xff]  }
  0x62   :  { %v1119_v23 = vld [vmem:[#allocation8 + $0x44] ss:$8 sps:$4 sm:$0xff]   ;;  %v1104_v24 = vld [vmem:[#allocation6 + $0x74] ss:$8 sps:$4 sm:$0xff]   ;;  %v1106_v25 = vld [vmem:[#allocation6 + $0x70] ss:$8 sps:$4 sm:$0xff]  }
  0x63   :  { %v1121_v26 = vld [vmem:[#allocation8 + $0x40] ss:$8 sps:$4 sm:$0xff]   ;;  %v1122_v27 = vld [vmem:[#allocation8 + $0x54] ss:$8 sps:$4 sm:$0xff]   ;;  %v1124_v29 = vld [vmem:[#allocation8 + $0x50] ss:$8 sps:$4 sm:$0xff]  }
  0x64   :  { %218 = vmatpush1.bf16.msra.mxu0 %v1091_v6  ;;  %465 = vmatpush1.bf16.msra.mxu1 %v1112_v14  ;;  %v104_v28 = vld [vmem:[#allocation3] sm:$0xf]  ;;  %v1125_v30 = vld [vmem:[#allocation8 + $0x64] ss:$8 sps:$4 sm:$0xff]   ;;  %v1127_v31 = vld [vmem:[#allocation8 + $0x60] ss:$8 sps:$4 sm:$0xff]   ;;  %v123_v14 = vlaneseq }
  0x65   :  { %219 = vmatprep.subr.bf16.mxu0 %v1092_v7  ;;  %466 = vmatprep.subr.bf16.mxu1 %v1113_v15  ;;  %v1128_v32 = vld [vmem:[#allocation8 + $0x74] ss:$8 sps:$4 sm:$0xff]   ;;  %v1130_v33 = vld [vmem:[#allocation8 + $0x70] ss:$8 sps:$4 sm:$0xff]   ;;  %v1131_v34 = vld [vmem:[#allocation8 + $0x84] ss:$8 sps:$4 sm:$0xff]  }
  0x66   :  { %v1133_v35 = vld [vmem:[#allocation8 + $0x80] ss:$8 sps:$4 sm:$0xff]   ;;  %v1134_v36 = vld [vmem:[#allocation8 + $0x94] ss:$8 sps:$4 sm:$0xff]   ;;  %v1136_v37 = vld [vmem:[#allocation8 + $0x90] ss:$8 sps:$4 sm:$0xff]  }
  0x67   :  { %v1137_v38 = vld [vmem:[#allocation8 + $0xa4] ss:$8 sps:$4 sm:$0xff]   ;;  %v1139_v39 = vld [vmem:[#allocation8 + $0xa0] ss:$8 sps:$4 sm:$0xff]   ;;  %v1140_v40 = vld [vmem:[#allocation8 + $0xb4] ss:$8 sps:$4 sm:$0xff]  }
  0x68   :  { %220 = vmatpush1.bf16.msra.mxu0 %v1094_v8  ;;  %467 = vmatpush1.bf16.msra.mxu1 %v1115_v18  ;;  %v1142_v41 = vld [vmem:[#allocation8 + $0xb0] ss:$8 sps:$4 sm:$0xff]   ;;  %v1143_v42 = vld [vmem:[#allocation8 + $0xc4] ss:$8 sps:$4 sm:$0xff]   ;;  %v1145_v43 = vld [vmem:[#allocation8 + $0xc0] ss:$8 sps:$4 sm:$0xff]  }
  0x69   :  { %221 = vmatprep.subr.bf16.mxu0 %v1095_v9  ;;  %468 = vmatprep.subr.bf16.mxu1 %v1116_v19  ;;  %v1146_v44 = vld [vmem:[#allocation8 + $0xd4] ss:$8 sps:$4 sm:$0xff]   ;;  %v1148_v45 = vld [vmem:[#allocation8 + $0xd0] ss:$8 sps:$4 sm:$0xff]   ;;  %v1149_v46 = vld [vmem:[#allocation8 + $0xe4] ss:$8 sps:$4 sm:$0xff]  }
  0x6a   :  { %v1151_v47 = vld [vmem:[#allocation8 + $0xe0] ss:$8 sps:$4 sm:$0xff]   ;;  %v1152_v48 = vld [vmem:[#allocation8 + $0xf4] ss:$8 sps:$4 sm:$0xff]   ;;  %v1154_v49 = vld [vmem:[#allocation8 + $0xf0] ss:$8 sps:$4 sm:$0xff]  }
  0x6b   :  { %v1155_v50 = vld [vmem:[#allocation9] ss:$8 sps:$4 sm:$0xff]   ;;  %v1157_v51 = vld [vmem:[#allocation9 + $0x4] ss:$8 sps:$4 sm:$0xff]   ;;  %v1160_v52 = vld [vmem:[#allocation9 + $0x14] ss:$8 sps:$4 sm:$0xff]  }
  0x6c   :  { %222 = vmatpush1.bf16.msra.mxu0 %v1097_v13  ;;  %469 = vmatpush1.bf16.msra.mxu1 %v1118_v22  ;;  %v1158_v53 = vld [vmem:[#allocation9 + $0x10] ss:$8 sps:$4 sm:$0xff]   ;;  %v1163_v54 = vld [vmem:[#allocation9 + $0x24] ss:$8 sps:$4 sm:$0xff]   ;;  %v1161_v55 = vld [vmem:[#allocation9 + $0x20] ss:$8 sps:$4 sm:$0xff]  }
  0x6d   :  { %223 = vmatprep.subr.bf16.mxu0 %v1098_v16  ;;  %470 = vmatprep.subr.bf16.mxu1 %v1119_v23  ;;  %v1166_v56 = vld [vmem:[#allocation9 + $0x34] ss:$8 sps:$4 sm:$0xff]   ;;  %v1164_v57 = vld [vmem:[#allocation9 + $0x30] ss:$8 sps:$4 sm:$0xff]   ;;  %v1169_v58 = vld [vmem:[#allocation9 + $0x44] ss:$8 sps:$4 sm:$0xff]  }
  0x6e   :  { %v1167_v59 = vld [vmem:[#allocation9 + $0x40] ss:$8 sps:$4 sm:$0xff]   ;;  %v1172_v60 = vld [vmem:[#allocation9 + $0x54] ss:$8 sps:$4 sm:$0xff]   ;;  %v1170_v61 = vld [vmem:[#allocation9 + $0x50] ss:$8 sps:$4 sm:$0xff]  }
  0x6f   :  { %v1175_v62 = vld [vmem:[#allocation9 + $0x64] ss:$8 sps:$4 sm:$0xff]   ;;  %v1173_v63 = vld [vmem:[#allocation9 + $0x60] ss:$8 sps:$4 sm:$0xff]   ;;  %v1178_v0 = vld [vmem:[#allocation9 + $0x74] ss:$8 sps:$4 sm:$0xff]  }
  0x70   :  { %224 = vmatpush1.bf16.msra.mxu0 %v1100_v17  ;;  %471 = vmatpush1.bf16.msra.mxu1 %v1121_v26  ;;  %v1176_v1 = vld [vmem:[#allocation9 + $0x70] ss:$8 sps:$4 sm:$0xff]   ;;  %v1181_v2 = vld [vmem:[#allocation9 + $0x84] ss:$8 sps:$4 sm:$0xff]   ;;  %v1179_v3 = vld [vmem:[#allocation9 + $0x80] ss:$8 sps:$4 sm:$0xff]  }
  0x71   :  { %225 = vmatprep.subr.bf16.mxu0 %v1101_v20  ;;  %472 = vmatprep.subr.bf16.mxu1 %v1122_v27  ;;  %v1184_v4 = vld [vmem:[#allocation9 + $0x94] ss:$8 sps:$4 sm:$0xff]   ;;  %v1182_v5 = vld [vmem:[#allocation9 + $0x90] ss:$8 sps:$4 sm:$0xff]   ;;  %v1187_v6 = vld [vmem:[#allocation9 + $0xa4] ss:$8 sps:$4 sm:$0xff]  }
  0x72   :  { %v1185_v7 = vld [vmem:[#allocation9 + $0xa0] ss:$8 sps:$4 sm:$0xff]   ;;  %v1190_v8 = vld [vmem:[#allocation9 + $0xb4] ss:$8 sps:$4 sm:$0xff]   ;;  %v1188_v9 = vld [vmem:[#allocation9 + $0xb0] ss:$8 sps:$4 sm:$0xff]  }
  0x73   :  { %v1193_v10 = vld [vmem:[#allocation9 + $0xc4] ss:$8 sps:$4 sm:$0xff]   ;;  %v1191_v11 = vld [vmem:[#allocation9 + $0xc0] ss:$8 sps:$4 sm:$0xff]   ;;  %v1196_v12 = vld [vmem:[#allocation9 + $0xd4] ss:$8 sps:$4 sm:$0xff]  }
  0x74   :  { %226 = vmatpush1.bf16.msra.mxu0 %v1103_v21  ;;  %473 = vmatpush1.bf16.msra.mxu1 %v1124_v29  ;;  %v1194_v13 = vld [vmem:[#allocation9 + $0xd0] ss:$8 sps:$4 sm:$0xff]   ;;  %v124_v15 = vshrl.u32 %v123_v14, 7  ;;  %v121_v17 = vld [vmem:[%s1536_s3] sm:$0x3]  ;;  %s942_s20 = sshll.u32 %s1371_s19, 4  ;;  %s943_s20 = int_to_ptr.vmem [resolvable:$true] %s942_s20 }
  0x75   :  { %227 = vmatprep.subr.bf16.mxu0 %v1104_v24  ;;  %474 = vmatprep.subr.bf16.mxu1 %v1125_v30  ;;  %v1033_v14 = vld [vmem:[%s1542_s9] ss:$0 sm:$0xff]  ;;  %s1331_s21 = scalar_lea.vmem %s943_s20, 128  ;;  %p1336_p13 = scmp.lt.s32.totalorder %s943_s20, %s943_s20 }
  0x76   :  { %v1496_v16 = vsub.s32 0, %v124_v15  ;;  %v1501_v18 = vsub.s32 1, %v124_v15  ;;  %p1332_p12 = scmp.ne.s32.totalorder %s943_s20, %s1331_s21  ;;  %p1337_p0 = scmp.lt.s32.totalorder %s1331_s21, %s1331_s21 }
  0x78   :  { %228 = vmatpush1.bf16.msra.mxu0 %v1106_v25  ;;  %475 = vmatpush1.bf16.msra.mxu1 %v1127_v31  ;;  %v126_v19 = vrot.slane %v121_v17, %v1496_v16  ;;  %v130_v20 = vrot.slane %v121_v17, %v1501_v18  ;;  %v1199_v31 = vld [vmem:[#allocation9 + $0xe4] ss:$8 sps:$4 sm:$0xff]   ;;  %p1338_p1 = por %p1337_p0, %p1336_p13 }
  0x79   :  { %476 = vmatprep.subr.bf16.mxu1 %v1128_v32  ;;  %711 = vmatprep.subr.bf16.mxu0 %v1157_v51  ;;  %v1197_v32 = vld [vmem:[#allocation9 + $0xe0] ss:$8 sps:$4 sm:$0xff]  }
  0x7a   :  { %p1339_p2 = pnand %p1338_p1, %p1332_p12 }
  0x7b   :  { %246 = vmatmul.mubr.bf16.vlgmr.msra.gmra.mrb[0].mxu0 %v104_v28 }
  0x7c   :  { %477 = vmatpush1.bf16.msra.mxu1 %v1130_v33  ;;  %712 = vmatpush1.bf16.msra.mxu0 %v1155_v50  ;;  %v1202_v33 = vld [vmem:[#allocation9 + $0xf4] ss:$8 sps:$4 sm:$0xff]  }
  0x7d   :  { %478 = vmatprep.subr.bf16.mxu1 %v1131_v34  ;;  %713 = vmatprep.subr.bf16.mxu0 %v1160_v52  ;;  %v1200_v34 = vld [vmem:[#allocation9 + $0xf0] ss:$8 sps:$4 sm:$0xff]  }
  0x80   :  { %479 = vmatpush1.bf16.msra.mxu1 %v1133_v35  ;;  %714 = vmatpush1.bf16.msra.mxu0 %v1158_v53  ;;  %v1203_v35 = vld [vmem:[#allocation11 + $0x40] sm:$0xff]  }
  0x81   :  { %480 = vmatprep.subr.bf16.mxu1 %v1134_v36  ;;  %715 = vmatprep.subr.bf16.mxu0 %v1163_v54  ;;  %v1204_v36 = vld [vmem:[#allocation11] sm:$0xff]  }
  0x84   :  { %481 = vmatpush1.bf16.msra.mxu1 %v1136_v37  ;;  %716 = vmatpush1.bf16.msra.mxu0 %v1161_v55  ;;  %v1205_v37 = vld [vmem:[#allocation11 + $0x48] sm:$0xff]  }
  0x85   :  { %482 = vmatprep.subr.bf16.mxu1 %v1137_v38  ;;  %717 = vmatprep.subr.bf16.mxu0 %v1166_v56  ;;  %v1206_v38 = vld [vmem:[#allocation11 + $0x8] sm:$0xff]  }
  0x88   :  { %483 = vmatpush1.bf16.msra.mxu1 %v1139_v39  ;;  %718 = vmatpush1.bf16.msra.mxu0 %v1164_v57  ;;  %v1207_v39 = vld [vmem:[#allocation11 + $0x50] sm:$0xff]  }
  0x89   :  { %484 = vmatprep.subr.bf16.mxu1 %v1140_v40  ;;  %719 = vmatprep.subr.bf16.mxu0 %v1169_v58  ;;  %v1208_v40 = vld [vmem:[#allocation11 + $0x10] sm:$0xff]  }
  0x8c   :  { %485 = vmatpush1.bf16.msra.mxu1 %v1142_v41  ;;  %720 = vmatpush1.bf16.msra.mxu0 %v1167_v59  ;;  %v1209_v41 = vld [vmem:[#allocation11 + $0x58] sm:$0xff]  }
  0x8d   :  { %486 = vmatprep.subr.bf16.mxu1 %v1143_v42  ;;  %721 = vmatprep.subr.bf16.mxu0 %v1172_v60  ;;  %v1210_v42 = vld [vmem:[#allocation11 + $0x18] sm:$0xff]   ;;  %v1215_v60 = vld [vmem:[#allocation11 + $0x70] sm:$0xff]  }
  0x90   :  { %487 = vmatpush1.bf16.msra.mxu1 %v1145_v43  ;;  %722 = vmatpush1.bf16.msra.mxu0 %v1170_v61  ;;  %v1211_v43 = vld [vmem:[#allocation11 + $0x60] sm:$0xff]   ;;  %v1216_v61 = vld [vmem:[#allocation11 + $0x30] sm:$0xff]  }
  0x91   :  { %488 = vmatprep.subr.bf16.mxu1 %v1146_v44  ;;  %723 = vmatprep.subr.bf16.mxu0 %v1175_v62  ;;  %v1212_v44 = vld [vmem:[#allocation11 + $0x20] sm:$0xff]   ;;  %v1217_v62 = vld [vmem:[#allocation11 + $0x78] sm:$0xff]  }
  0x94   :  { %489 = vmatpush1.bf16.msra.mxu1 %v1148_v45  ;;  %724 = vmatpush1.bf16.msra.mxu0 %v1173_v63  ;;  %v1213_v45 = vld [vmem:[#allocation11 + $0x68] sm:$0xff]   ;;  %v1218_v63 = vld [vmem:[#allocation11 + $0x38] sm:$0xff]  }
  0x95   :  { %490 = vmatprep.subr.bf16.mxu1 %v1149_v46  ;;  %725 = vmatprep.subr.bf16.mxu0 %v1178_v0  ;;  %v1214_v46 = vld [vmem:[#allocation11 + $0x28] sm:$0xff]   ;;  %v539_v0 = vld [vmem:[%s1540_s7] sm:$0x3] }
  0x98   :  { %491 = vmatpush1.bf16.msra.mxu1 %v1151_v47  ;;  %726 = vmatpush1.bf16.msra.mxu0 %v1176_v1  ;;  %v290_v47 = vld [vmem:[%s1538_s5] sm:$0x3]  ;;  %v544_v1 = vrot.slane %v539_v0, %v1496_v16 }
  0x99   :  { %492 = vmatprep.subr.bf16.mxu1 %v1152_v48  ;;  %727 = vmatprep.subr.bf16.mxu0 %v1181_v2  ;;  %v295_v48 = vrot.slane %v290_v47, %v1496_v16  ;;  %v548_v2 = vrot.slane %v539_v0, %v1501_v18 }
  0x9c   :  { %493 = vmatpush1.bf16.msra.mxu1 %v1154_v49  ;;  %728 = vmatpush1.bf16.msra.mxu0 %v1179_v3  ;;  %v299_v49 = vrot.slane %v290_v47, %v1501_v18 }
  0x9d   :  { %729 = vmatprep.subr.bf16.mxu0 %v1184_v4  ;;  %1050 = vmatprep.subr.bf16.mxu1 %v1203_v35 }
  0xa0   :  { %730 = vmatpush1.bf16.msra.mxu0 %v1182_v5 }
  0xa1   :  { %731 = vmatprep.subr.bf16.mxu0 %v1187_v6 }
  0xa4   :  { %732 = vmatpush1.bf16.msra.mxu0 %v1185_v7 }
  0xa5   :  { %733 = vmatprep.subr.bf16.mxu0 %v1190_v8 }
  0xa8   :  { %734 = vmatpush1.bf16.msra.mxu0 %v1188_v9 }
  0xa9   :  { %735 = vmatprep.subr.bf16.mxu0 %v1193_v10 }
  0xac   :  { %736 = vmatpush1.bf16.msra.mxu0 %v1191_v11 }
  0xad   :  { %737 = vmatprep.subr.bf16.mxu0 %v1196_v12 }
  0xb0   :  { %738 = vmatpush1.bf16.msra.mxu0 %v1194_v13 }
  0xb1   :  { %739 = vmatprep.subr.bf16.mxu0 %v1199_v31 }
  0xb4   :  { %740 = vmatpush1.bf16.msra.mxu0 %v1197_v32 }
  0xb5   :  { %741 = vmatprep.subr.bf16.mxu0 %v1202_v33 }
  0xb8   :  { %742 = vmatpush1.bf16.msra.mxu0 %v1200_v34 }
 0x14e   :  { %v247_v21 = vpop.f32.mrb[0].mxu0 }
 0x14f   :  { %v248_v22 = vadd.f32 %v247_v21, %v126_v19  ;;  %v249_v23 = vpop.f32.mrb[1].mxu0 }
 0x150   :  { %v250_v24 = vadd.f32 %v249_v23, %v130_v20  ;;  %v251_v25 = vpop.f32.mrb[2].mxu0  ;;  %v933_v20 = vstv %s1533_s0 }
 0x151   :  { %v254_v26 = vmax.f32 %v248_v22, 0.0  ;;  %v252_v27 = vpop.f32.mrb[3].mxu0 }
 0x152   :  { %v255_v28 = vmax.f32 %v250_v24, 0.0 }
 0x153   :  { %v256_v30 = vpack.c.bf16 %v254_v26, %v254_v26 }
 0x154   :  { %v257_v29 = vpack.c.bf16 %v255_v28, %v255_v28 }
 0x156   :  { %494 = vmatprep.mubr.bf16.mxu1 %v257_v29 }
 0x157   :  { %495 = vmatmul.mubr.bf16.vlgmr.msra.gmra.mrb[0].mxu1 %v256_v30 }
 0x158   :  { %1051 = vmatpush3.bf16.msra.mxu1 %v1204_v36 }
 0x159   :  { %1052 = vmatprep.subr.bf16.mxu1 %v1205_v37 }
 0x15c   :  { %1053 = vmatpush3.bf16.msra.mxu1 %v1206_v38 }
 0x15d   :  { %1054 = vmatprep.subr.bf16.mxu1 %v1207_v39 }
 0x160   :  { %1055 = vmatpush3.bf16.msra.mxu1 %v1208_v40 }
 0x161   :  { %1056 = vmatprep.subr.bf16.mxu1 %v1209_v41 }
 0x164   :  { %1057 = vmatpush3.bf16.msra.mxu1 %v1210_v42 }
 0x165   :  { %1058 = vmatprep.subr.bf16.mxu1 %v1211_v43 }
 0x168   :  { %1059 = vmatpush3.bf16.msra.mxu1 %v1212_v44 }
 0x169   :  { %1060 = vmatprep.subr.bf16.mxu1 %v1213_v45 }
 0x16c   :  { %1061 = vmatpush3.bf16.msra.mxu1 %v1214_v46 }
 0x16d   :  { %1062 = vmatprep.subr.bf16.mxu1 %v1215_v60 }
 0x170   :  { %1063 = vmatpush3.bf16.msra.mxu1 %v1216_v61 }
 0x171   :  { %1064 = vmatprep.subr.bf16.mxu1 %v1217_v62 }
 0x174   :  { %1065 = vmatpush3.bf16.msra.mxu1 %v1218_v63 }
 0x22a   :  { %v496_v50 = vpop.f32.mrb[0].mxu1 }
 0x22b   :  { %v497_v51 = vadd.f32 %v496_v50, %v295_v48  ;;  %v498_v52 = vpop.f32.mrb[1].mxu1 }
 0x22c   :  { %v499_v53 = vadd.f32 %v498_v52, %v299_v49  ;;  %v500_v54 = vpop.f32.mrb[2].mxu1 }
 0x22d   :  { %v503_v55 = vmax.f32 %v497_v51, 0.0  ;;  %v501_v56 = vpop.f32.mrb[3].mxu1 }
 0x22e   :  { %v504_v57 = vmax.f32 %v499_v53, 0.0 }
 0x22f   :  { %v505_v59 = vpack.c.bf16 %v503_v55, %v503_v55 }
 0x230   :  { %v506_v58 = vpack.c.bf16 %v504_v57, %v504_v57 }
 0x232   :  { %743 = vmatprep.mubr.bf16.mxu0 %v506_v58 }
 0x233   :  { %744 = vmatmul.mubr.bf16.vlgmr.msra.gmra.mrb[4].mxu0 %v505_v59 }
 0x306   :  { %v745_v3 = vpop.f32.mrb[4].mxu0 }
 0x307   :  { %v746_v4 = vadd.f32 %v745_v3, %v544_v1  ;;  %v747_v5 = vpop.f32.mrb[5].mxu0 }
 0x308   :  { %v748_v6 = vadd.f32 %v747_v5, %v548_v2  ;;  %v749_v7 = vpop.f32.mrb[6].mxu0 }
 0x309   :  { %v752_v8 = vmax.f32 %v746_v4, 0.0  ;;  %v750_v9 = vpop.f32.mrb[7].mxu0 }
 0x30a   :  { %v753_v10 = vmax.f32 %v748_v6, 0.0 }
 0x30b   :  { %v754_v12 = vpack.c.bf16 %v752_v8, %v752_v8 }
 0x30c   :  { %v755_v11 = vpack.c.bf16 %v753_v10, %v753_v10 }
 0x30e   :  { %924 = vmatprep.mubr.bf16.mxu1 %v755_v11 }
 0x30f   :  { %925 = vmatmul.mubr.bf16.vlgmr.msra.gmra.mrb[4].mxu1 %v754_v12 }
 0x3e2   :  { %v1066_v13 = vpop.f32.mrb[4].mxu1 }
 0x3e3   :  { %v1067_v15 = vpop.f32.mrb[5].mxu1 }
 0x3e4   :  { %v1068_v16 = vadd.f32 %v1067_v15, %v1066_v13  ;;  %v1069_v17 = vpop.f32.mrb[6].mxu1 }
 0x3e5   :  { %v1070_v18 = vpop.f32.mrb[7].mxu1 }
 0x3e6   :  { %v927_v19 = vadd.f32 %v1068_v16, %v1033_v14 }
 0x3e8   :  { %1219 = vtanh.f32 %v927_v19 }
 0x3f2   :  { %v1220_v21 = vpop.eup %1219 }
 0x3f3   :  { %v934_v22 = vmul.f32 %v1220_v21, %v933_v20 }
 0x3f5   :  { %935 = vst [vmem:[#allocation12] sm:$0xff] %v934_v22 }
 0x3f6   :  { %1342 = shalt.err (!%p1339_p2)
}
 0x3f7   :  { %s1343_s30 = scalar_lea.hbm %s1543_s10, 128 }
 0x3f8   :  { %p1344_p3 = scmp.ne.s32.totalorder %s1543_s10, %s1343_s30  ;;  %p1347_p4 = scmp.lt.u32.totalorder %s1343_s30, %s1543_s10 }
 0x3fa   :  { %p1349_p5 = pnand %p1347_p4, %p1344_p3 }
 0x3fc   :  { %1352 = shalt.err (!%p1349_p5)
}
 0x3fd   :  { %945 = dma.vmem_to_hbm [thread:$0]  %s943_s20, 128, %s1543_s10, [#allocation5]  }
 0x3fe   :  { %1359 = dma.done.wait [#allocation5], 128  }
 0x3ff   :  { %1360 = vsyncadd [#allocation5], 4294967168 }
 0x400   :  { %949 = vsyncpa [#allocation4], 1 }
 0x401   :  { %950 = vsyncpa [#allocation7], 1 }
 0x402   :  { %951 = vsyncpa [#allocation10], 1 }
 0x403   :  { %952 = vsyncpa [#allocation5], 1 }

</bundles_post_ra>
